<compile_context>
chip_gen: v6e
topology: v6e:2x2x1
jax: 0.10.0
libtpu: 0.0.40
codegen_flags: <defaults>
</compile_context>

<pallas_src>
import numpy as np
import jax
import jax.numpy as jnp
from jax.experimental import pallas as pl
from jax.experimental.pallas import tpu as pltpu


def _round_up(x, m):
    return ((x + m - 1) // m) * m


# ----------------------------------------------------------------------------
# Fused kernel: per-graph  (slab @ W + bias) -> mask -> token slab
# ----------------------------------------------------------------------------
def make_fused_kernel(max_n, max_e, max_n_pad, max_e_pad):
    def kernel(ncnt_ref, ecnt_ref,                  # scalar prefetch (SMEM)
               fv_ref, fe_ref,                      # per-graph feature slabs (bf16)
               wv_ref, we_ref,                      # folded weights (bf16, resident)
               bv_ref, be_ref, gt_ref,              # f32 biases / [graph] token
               tok_ref):                            # out block (seq_len, H_pad) f32
        g = pl.program_id(0)
        n_nodes = ncnt_ref[g]
        n_edges = ecnt_ref[g]

        # [graph] token row
        tok_ref[0:1, :] = gt_ref[...]

        # node tokens: fused projection (bf16 x bf16 -> f32 acc) + bias + pad mask
        node = (jnp.dot(fv_ref[...], wv_ref[...],
                        preferred_element_type=jnp.float32) + bv_ref[...])
        nrow = jax.lax.broadcasted_iota(jnp.int32, (max_n_pad, 1), 0)
        node = jnp.where(nrow < n_nodes, node, 0.0)
        tok_ref[1:1 + max_n, :] = node[:max_n].astype(tok_ref.dtype)

        # edge tokens
        edge = (jnp.dot(fe_ref[...], we_ref[...],
                        preferred_element_type=jnp.float32) + be_ref[...])
        erow = jax.lax.broadcasted_iota(jnp.int32, (max_e_pad, 1), 0)
        edge = jnp.where(erow < n_edges, edge, 0.0)
        tok_ref[1 + max_n:1 + max_n + max_e, :] = edge[:max_e].astype(tok_ref.dtype)

    return kernel


def fused_project_assemble(node_cnt, edge_cnt, fv_pack, fe_pack,
                           w_v, w_e, bias_v, bias_e, graph_token,
                           *, num_graphs, max_n, max_e, max_n_pad, max_e_pad,
                           seq_len, h_pad):
    kv = fv_pack.shape[1]
    ke = fe_pack.shape[1]
    kernel = make_fused_kernel(max_n, max_e, max_n_pad, max_e_pad)
    # TODO(synk): for extremely large single graphs (max_n_pad / seq_len blocks
    # exceeding the VMEM budget) add a second, row-tile grid axis inside each
    # graph instead of a single per-graph block.
    grid_spec = pltpu.PrefetchScalarGridSpec(
        num_scalar_prefetch=2,
        grid=(num_graphs,),
        in_specs=[
            pl.BlockSpec((max_n_pad, kv), lambda g, nc, ec: (g, 0)),   # streamed slab
            pl.BlockSpec((max_e_pad, ke), lambda g, nc, ec: (g, 0)),   # streamed slab
            pl.BlockSpec((kv, h_pad), lambda g, nc, ec: (0, 0)),       # W_v resident
            pl.BlockSpec((ke, h_pad), lambda g, nc, ec: (0, 0)),       # W_e resident
            pl.BlockSpec((1, h_pad), lambda g, nc, ec: (0, 0)),        # bias_v
            pl.BlockSpec((1, h_pad), lambda g, nc, ec: (0, 0)),        # bias_e
            pl.BlockSpec((1, h_pad), lambda g, nc, ec: (0, 0)),        # graph token
        ],
        out_specs=pl.BlockSpec((None, seq_len, h_pad), lambda g, nc, ec: (g, 0, 0)),
    )
    return pl.pallas_call(
        kernel,
        grid_spec=grid_spec,
        out_shape=jax.ShapeDtypeStruct((num_graphs, seq_len, h_pad), jnp.float32),
        compiler_params=pltpu.CompilerParams(
            dimension_semantics=("parallel",),          # graphs independent (megacore)
            vmem_limit_bytes=64 * 1024 * 1024),
    )(node_cnt, edge_cnt, fv_pack, fe_pack, w_v, w_e, bias_v, bias_e, graph_token)


# ----------------------------------------------------------------------------
# Parameter init (mirrors the module's __init__ shapes)
# ----------------------------------------------------------------------------
def xavier_uniform(key, shape, fan_in, fan_out):
    bound = float(np.sqrt(6.0 / (fan_in + fan_out)))
    return jax.random.uniform(key, shape, jnp.float32, -bound, bound)


# ----------------------------------------------------------------------------
# Full forward (GraphFeatureTokenizer, method='orf', use_graph_token=True)
# ----------------------------------------------------------------------------
def graph_feature_tokenizer_forward(params, x, edge_attr, edge_index, batch,
                                    num_graphs, d_p, hidden_dim, key_orf):
    num_nodes = x.shape[0]
    num_edges = edge_index.shape[1]
    node_feat_dim = x.shape[1]
    d_e = params["E_V"].shape[1]
    h_pad = _round_up(hidden_dim, 128)        # lane-dense hidden (unmasked stores)

    # --- node identifiers (ORF): random normal + QR ---------------------------
    # TODO(synk): QR (and the 'laplacian' eigh variant) have no clean Pallas
    # equivalent; computed in plain JAX/XLA.
    P_raw = jax.random.normal(key_orf, (num_nodes, d_p), jnp.float32)
    P, _ = jnp.linalg.qr(P_raw)                                        # (N, d_p)

    # --- per-graph counts (host side; defines static seq_len, mirroring the
    #     PyTorch .item() calls). Single device_get, no later kernel syncs. ----
    batch_np, ei_np = jax.device_get((batch, edge_index))
    batch_np = np.asarray(batch_np)
    ei_np = np.asarray(ei_np)
    edge_batch_np = batch_np[ei_np[0]]
    # contiguous-per-graph grouping is assumed by the module's slab slicing
    assert np.all(np.diff(batch_np) >= 0), "nodes must be grouped by graph"
    assert np.all(np.diff(edge_batch_np) >= 0), "edges must be grouped by graph"

    node_num = np.bincount(batch_np, minlength=num_graphs).astype(np.int64)
    edge_num = np.bincount(edge_batch_np, minlength=num_graphs).astype(np.int64)
    max_n = int(node_num.max())
    max_e = int(edge_num.max())
    seq_len = 1 + max_n + max_e
    max_n_pad = _round_up(max(max_n, 1), 16)   # 16-row aligned slabs (bf16 sublane tile)
    max_e_pad = _round_up(max(max_e, 1), 16)
    node_ptr = np.concatenate([[0], np.cumsum(node_num)])
    edge_ptr = np.concatenate([[0], np.cumsum(edge_num)])

    # destination rows in the aligned per-graph packed layout (static host data)
    node_dest = (np.arange(num_nodes) - node_ptr[batch_np]
                 + batch_np.astype(np.int64) * max_n_pad).astype(np.int32)
    edge_dest = (np.arange(num_edges) - edge_ptr[edge_batch_np]
                 + edge_batch_np.astype(np.int64) * max_e_pad).astype(np.int32)
    node_cnt = jnp.asarray(node_num.astype(np.int32))
    edge_cnt = jnp.asarray(edge_num.astype(np.int32))

    # --- fold type identifiers into biases; fold duplicated P into W ----------
    W, b = params["W"], params["b"]
    W_x = W[:node_feat_dim]
    W_p1 = W[node_feat_dim:node_feat_dim + d_p]
    W_p2 = W[node_feat_dim + d_p:node_feat_dim + 2 * d_p]
    W_t = W[node_feat_dim + 2 * d_p:]
    kv = node_feat_dim + d_p              # node token K (x, P)  -- P duplication folded
    ke = node_feat_dim + 2 * d_p          # edge token K (edge_attr, P_u, P_v)
    kv_pad = _round_up(kv, 16)
    ke_pad = _round_up(ke, 16)
    pad_h = h_pad - hidden_dim

    W_v = jnp.concatenate([W_x, W_p1 + W_p2], axis=0)                  # (kv, hidden)
    W_e = jnp.concatenate([W_x, W_p1, W_p2], axis=0)                   # (ke, hidden)
    bias_v = b[None, :] + jnp.dot(params["E_V"], W_t,
                                  precision=jax.lax.Precision.HIGHEST)
    bias_e = b[None, :] + jnp.dot(params["E_E"], W_t,
                                  precision=jax.lax.Precision.HIGHEST)

    W_v = jnp.pad(W_v, ((0, kv_pad - kv), (0, pad_h))).astype(jnp.bfloat16)
    W_e = jnp.pad(W_e, ((0, ke_pad - ke), (0, pad_h))).astype(jnp.bfloat16)
    bias_v = jnp.pad(bias_v, ((0, 0), (0, pad_h)))                     # f32
    bias_e = jnp.pad(bias_e, ((0, 0), (0, pad_h)))                     # f32
    gt = jnp.pad(params["graph_token"], ((0, 0), (0, pad_h)))          # f32

    # --- per-graph aligned feature slabs (bf16) --------------------------------
    F_v = jnp.concatenate([x, P], axis=1)                              # (N, kv)
    F_e = jnp.concatenate([edge_attr, P[edge_index[0]], P[edge_index[1]]], axis=1)
    F_v = jnp.pad(F_v, ((0, 0), (0, kv_pad - kv)))
    F_e = jnp.pad(F_e, ((0, 0), (0, ke_pad - ke)))
    fv_pack = jnp.zeros((num_graphs * max_n_pad, kv_pad), jnp.bfloat16
                        ).at[jnp.asarray(node_dest)].set(F_v.astype(jnp.bfloat16))
    fe_pack = jnp.zeros((num_graphs * max_e_pad, ke_pad), jnp.bfloat16
                        ).at[jnp.asarray(edge_dest)].set(F_e.astype(jnp.bfloat16))

    # --- fused projection + token assembly (single Pallas kernel) --------------
    tokens_pad = fused_project_assemble(
        node_cnt, edge_cnt, fv_pack, fe_pack, W_v, W_e, bias_v, bias_e, gt,
        num_graphs=num_graphs, max_n=max_n, max_e=max_e,
        max_n_pad=max_n_pad, max_e_pad=max_e_pad, seq_len=seq_len, h_pad=h_pad)
    tokens = tokens_pad[..., :hidden_dim] if h_pad != hidden_dim else tokens_pad

    # attention mask depends only on host-side counts -> built host-side
    pos = np.arange(seq_len)[None, :]
    msk = ((pos == 0)
           | ((pos >= 1) & (pos < 1 + node_num[:, None]))
           | ((pos >= 1 + max_n) & (pos < 1 + max_n + edge_num[:, None])))
    attn_mask = jnp.asarray(msk)

    aux = dict(P=P, node_ptr=node_ptr, edge_ptr=edge_ptr, node_num=node_num,
               edge_num=edge_num, max_n=max_n, max_e=max_e, seq_len=seq_len)
    return tokens, attn_mask, aux


# ----------------------------------------------------------------------------
if __name__ == "__main__":
    key = jax.random.PRNGKey(0)

    # node_feat_dim must equal edge_feat_dim: w_in has one input_dim shared by
    # node and edge tokens (same constraint as the PyTorch module).
    node_feat_dim = edge_feat_dim = 6
    hidden_dim = 32
    d_p, d_e = 4, 4
    input_dim = node_feat_dim + 2 * d_p + d_e
    num_graphs = 2

    # small deterministic 2-graph batch: graph 0 = nodes 0..4, graph 1 = nodes 5..7
    batch = jnp.asarray(np.array([0, 0, 0, 0, 0, 1, 1, 1], np.int32))
    edge_index = jnp.asarray(np.array(
        [[0, 1, 1, 2, 3, 4, 5, 6, 6, 7],
         [1, 0, 2, 3, 4, 0, 6, 5, 7, 5]], np.int32))
    num_nodes = 8
    num_edges = 10

    (k_x, k_ea, k_orf, k_ev, k_ee, k_w, k_gt) = jax.random.split(key, 7)
    x = jax.random.normal(k_x, (num_nodes, node_feat_dim), jnp.float32)
    edge_attr = jax.random.normal(k_ea, (num_edges, edge_feat_dim), jnp.float32)

    params = {
        "E_V": xavier_uniform(k_ev, (1, d_e), fan_in=d_e, fan_out=1),
        "E_E": xavier_uniform(k_ee, (1, d_e), fan_in=d_e, fan_out=1),
        # stored as (input_dim, hidden) so the projection is X @ W + b
        "W": xavier_uniform(k_w, (input_dim, hidden_dim),
                            fan_in=input_dim, fan_out=hidden_dim),
        "b": jnp.zeros((hidden_dim,), jnp.float32),
        "graph_token": xavier_uniform(k_gt, (1, hidden_dim),
                                      fan_in=hidden_dim, fan_out=1),
    }

    tokens, attn_mask, aux = graph_feature_tokenizer_forward(
        params, x, edge_attr, edge_index, batch, num_graphs,
        d_p, hidden_dim, k_orf)
    tokens = jax.block_until_ready(tokens)
    attn_mask = jax.block_until_ready(attn_mask)

    # ------------------------- correctness checks ------------------------------
    node_ptr, edge_ptr = aux["node_ptr"], aux["edge_ptr"]
    max_n, max_e, seq_len = aux["max_n"], aux["max_e"], aux["seq_len"]
    P_np = np.asarray(aux["P"], np.float32)
    x_np = np.asarray(x, np.float32)
    ea_np = np.asarray(edge_attr, np.float32)
    W_np = np.asarray(params["W"], np.float32)
    b_np = np.asarray(params["b"], np.float32)
    EV_np = np.asarray(params["E_V"], np.float32)
    EE_np = np.asarray(params["E_E"], np.float32)
    gt_np = np.asarray(params["graph_token"], np.float32)
    ei_np = np.asarray(edge_index)

    def bf16q(a):  # bf16 round-trip matching the kernel's input quantization
        return np.asarray(jnp.asarray(a, jnp.float32).astype(jnp.bfloat16)
                          .astype(jnp.float32))

    nf = node_feat_dim
    W_x_np, W_p1_np = W_np[:nf], W_np[nf:nf + d_p]
    W_p2_np, W_t_np = W_np[nf + d_p:nf + 2 * d_p], W_np[nf + 2 * d_p:]

    # (a) tight reference: same bf16-quantized inputs / folded algebra as kernel
    Wv_q = bf16q(np.concatenate([W_x_np, W_p1_np + W_p2_np], 0))
    We_q = bf16q(np.concatenate([W_x_np, W_p1_np, W_p2_np], 0))
    bias_v_np = b_np + EV_np @ W_t_np
    bias_e_np = b_np + EE_np @ W_t_np
    Fv_q = bf16q(np.concatenate([x_np, P_np], 1))
    Fe_q = bf16q(np.concatenate([ea_np, P_np[ei_np[0]], P_np[ei_np[1]]], 1))
    Xv_tight = Fv_q @ Wv_q + bias_v_np
    Xe_tight = Fe_q @ We_q + bias_e_np

    # (b) loose reference: original f32 module formulation (checks folding/layout)
    EVb = np.broadcast_to(EV_np, (num_nodes, d_e))
    EEb = np.broadcast_to(EE_np, (num_edges, d_e))
    Xv_loose = np.concatenate([x_np, P_np, P_np, EVb], 1) @ W_np + b_np
    Xe_loose = np.concatenate([ea_np, P_np[ei_np[0]], P_np[ei_np[1]], EEb], 1) @ W_np + b_np

    tok_tight = np.zeros((num_graphs, seq_len, hidden_dim), np.float32)
    tok_loose = np.zeros_like(tok_tight)
    msk_ref = np.zeros((num_graphs, seq_len), bool)
    for i in range(num_graphs):
        idx = 0
        tok_tight[i, idx] = gt_np[0]
        tok_loose[i, idx] = gt_np[0]
        msk_ref[i, idx] = True
        idx += 1
        ns, ne = int(node_ptr[i]), int(node_ptr[i + 1])
        tok_tight[i, idx:idx + (ne - ns)] = Xv_tight[ns:ne]
        tok_loose[i, idx:idx + (ne - ns)] = Xv_loose[ns:ne]
        msk_ref[i, idx:idx + (ne - ns)] = True
        idx += max_n
        es, ee = int(edge_ptr[i]), int(edge_ptr[i + 1])
        tok_tight[i, idx:idx + (ee - es)] = Xe_tight[es:ee]
        tok_loose[i, idx:idx + (ee - es)] = Xe_loose[es:ee]
        msk_ref[i, idx:idx + (ee - es)] = True

    tok_np = np.asarray(tokens)
    np.testing.assert_allclose(tok_np, tok_tight, rtol=1e-5, atol=1e-5)
    np.testing.assert_allclose(tok_np, tok_loose, rtol=5e-2, atol=8e-2)
    assert np.array_equal(np.asarray(attn_mask), msk_ref)
    assert tokens.shape == (num_graphs, seq_len, hidden_dim)
    assert attn_mask.shape == (num_graphs, seq_len) and attn_mask.dtype == jnp.bool_

    print("KERNEL_OK")
</pallas_src>

<mosaic_0001>
module attributes {stable_mosaic.version = 11 : i64} {
  func.func @kernel(%arg0: i32, %arg1: memref<2xi32, #tpu.memory_space<smem>>, %arg2: memref<2xi32, #tpu.memory_space<smem>>, %arg3: memref<16x16xbf16, #tpu.memory_space<vmem>>, %arg4: memref<16x16xbf16, #tpu.memory_space<vmem>>, %arg5: memref<16x128xbf16, #tpu.memory_space<vmem>>, %arg6: memref<16x128xbf16, #tpu.memory_space<vmem>>, %arg7: memref<1x128xf32, #tpu.memory_space<vmem>>, %arg8: memref<1x128xf32, #tpu.memory_space<vmem>>, %arg9: memref<1x128xf32, #tpu.memory_space<vmem>>, %arg10: memref<1x12x128xf32, #tpu.memory_space<vmem>>) attributes {dimension_semantics = [#tpu.dimension_semantics<parallel>], iteration_bounds = array<i64: 2>, scalar_prefetch = 2 : i64, scratch_operands = 0 : i64, tpu.core_type = #tpu.core_type<tc>, window_params = [{transform_indices = @transform_0, window_bounds = array<i64: 16, 16>}, {transform_indices = @transform_1, window_bounds = array<i64: 16, 16>}, {pipeline_mode = #tpu.pipeline_mode<synchronous>, transform_indices = @transform_2, window_bounds = array<i64: 16, 128>}, {pipeline_mode = #tpu.pipeline_mode<synchronous>, transform_indices = @transform_3, window_bounds = array<i64: 16, 128>}, {pipeline_mode = #tpu.pipeline_mode<synchronous>, transform_indices = @transform_4, window_bounds = array<i64: 1, 128>}, {pipeline_mode = #tpu.pipeline_mode<synchronous>, transform_indices = @transform_5, window_bounds = array<i64: 1, 128>}, {pipeline_mode = #tpu.pipeline_mode<synchronous>, transform_indices = @transform_6, window_bounds = array<i64: 1, 128>}, {transform_indices = @transform_7, window_bounds = array<i64: 1, 12, 128>}]} {
    %0 = arith.index_cast %arg0 : i32 to index
    %1 = memref.load %arg1[%0] : memref<2xi32, #tpu.memory_space<smem>>
    %2 = arith.index_cast %arg0 : i32 to index
    %3 = memref.load %arg2[%2] : memref<2xi32, #tpu.memory_space<smem>>
    %c0 = arith.constant 0 : index
    %c0_0 = arith.constant 0 : index
    %4 = vector.load %arg9[%c0, %c0_0] : memref<1x128xf32, #tpu.memory_space<vmem>>, vector<1x128xf32>
    %c0_1 = arith.constant 0 : index
    %c0_2 = arith.constant 0 : index
    %c0_3 = arith.constant 0 : index
    %5 = vector.load %arg10[%c0_1, %c0_2, %c0_3] : memref<1x12x128xf32, #tpu.memory_space<vmem>>, vector<1x1x128xf32>
    %6 = vector.shape_cast %5 : vector<1x1x128xf32> to vector<1x128xf32>
    %7 = vector.shape_cast %4 : vector<1x128xf32> to vector<1x1x128xf32>
    tpu.vector_store %arg10[%c0_1, %c0_2, %c0_3], %7 {strides = array<i32>} : memref<1x12x128xf32, #tpu.memory_space<vmem>>, vector<1x1x128xf32>,
    %c0_4 = arith.constant 0 : index
    %c0_5 = arith.constant 0 : index
    %8 = vector.load %arg3[%c0_4, %c0_5] : memref<16x16xbf16, #tpu.memory_space<vmem>>, vector<16x16xbf16>
    %c0_6 = arith.constant 0 : index
    %c0_7 = arith.constant 0 : index
    %9 = vector.load %arg5[%c0_6, %c0_7] : memref<16x128xbf16, #tpu.memory_space<vmem>>, vector<16x128xbf16>
    %cst = arith.constant dense<0.000000e+00> : vector<16x128xf32>
    %10 = tpu.matmul %8, %9, %cst {dimension_numbers = #tpu.dot_dimension_numbers<[1], [0], [0], [1], [0, 0, 1, 1], [], []>} : vector<16x16xbf16>, vector<16x128xbf16>, vector<16x128xf32> -> vector<16x128xf32>
    %c0_8 = arith.constant 0 : index
    %c0_9 = arith.constant 0 : index
    %11 = vector.load %arg7[%c0_8, %c0_9] : memref<1x128xf32, #tpu.memory_space<vmem>>, vector<1x128xf32>
    %12 = vector.broadcast %11 : vector<1x128xf32> to vector<16x128xf32>
    %13 = arith.addf %10, %12 : vector<16x128xf32>
    %14 = tpu.iota {dimensions = array<i32: 0>} : vector<16x1xi32>
    %15 = vector.broadcast %1 : i32 to vector<16x1xi32>
    %16 = arith.cmpi slt, %14, %15 : vector<16x1xi32>
    %cst_10 = arith.constant 0.000000e+00 : f32
    %17 = vector.shape_cast %16 : vector<16x1xi1> to vector<16x1xi1>
    %18 = vector.broadcast %17 : vector<16x1xi1> to vector<16x128xi1>
    %19 = vector.broadcast %cst_10 : f32 to vector<16x128xf32>
    %20 = arith.select %18, %13, %19 : vector<16x128xi1>, vector<16x128xf32>
    %21 = vector.extract_strided_slice %20 {offsets = [0, 0], sizes = [5, 128], strides = [1, 1]} : vector<16x128xf32> to vector<5x128xf32>
    %c0_11 = arith.constant 0 : index
    %c1 = arith.constant 1 : index
    %c0_12 = arith.constant 0 : index
    %22 = vector.load %arg10[%c0_11, %c1, %c0_12] : memref<1x12x128xf32, #tpu.memory_space<vmem>>, vector<1x5x128xf32>
    %23 = vector.shape_cast %22 : vector<1x5x128xf32> to vector<5x128xf32>
    %24 = vector.shape_cast %21 : vector<5x128xf32> to vector<1x5x128xf32>
    tpu.vector_store %arg10[%c0_11, %c1, %c0_12], %24 {strides = array<i32>} : memref<1x12x128xf32, #tpu.memory_space<vmem>>, vector<1x5x128xf32>,
    %c0_13 = arith.constant 0 : index
    %c0_14 = arith.constant 0 : index
    %25 = vector.load %arg4[%c0_13, %c0_14] : memref<16x16xbf16, #tpu.memory_space<vmem>>, vector<16x16xbf16>
    %c0_15 = arith.constant 0 : index
    %c0_16 = arith.constant 0 : index
    %26 = vector.load %arg6[%c0_15, %c0_16] : memref<16x128xbf16, #tpu.memory_space<vmem>>, vector<16x128xbf16>
    %cst_17 = arith.constant dense<0.000000e+00> : vector<16x128xf32>
    %27 = tpu.matmul %25, %26, %cst_17 {dimension_numbers = #tpu.dot_dimension_numbers<[1], [0], [0], [1], [0, 0, 1, 1], [], []>} : vector<16x16xbf16>, vector<16x128xbf16>, vector<16x128xf32> -> vector<16x128xf32>
    %c0_18 = arith.constant 0 : index
    %c0_19 = arith.constant 0 : index
    %28 = vector.load %arg8[%c0_18, %c0_19] : memref<1x128xf32, #tpu.memory_space<vmem>>, vector<1x128xf32>
    %29 = vector.broadcast %28 : vector<1x128xf32> to vector<16x128xf32>
    %30 = arith.addf %27, %29 : vector<16x128xf32>
    %31 = tpu.iota {dimensions = array<i32: 0>} : vector<16x1xi32>
    %32 = vector.broadcast %3 : i32 to vector<16x1xi32>
    %33 = arith.cmpi slt, %31, %32 : vector<16x1xi32>
    %cst_20 = arith.constant 0.000000e+00 : f32
    %34 = vector.shape_cast %33 : vector<16x1xi1> to vector<16x1xi1>
    %35 = vector.broadcast %34 : vector<16x1xi1> to vector<16x128xi1>
    %36 = vector.broadcast %cst_20 : f32 to vector<16x128xf32>
    %37 = arith.select %35, %30, %36 : vector<16x128xi1>, vector<16x128xf32>
    %38 = vector.extract_strided_slice %37 {offsets = [0, 0], sizes = [6, 128], strides = [1, 1]} : vector<16x128xf32> to vector<6x128xf32>
    %c0_21 = arith.constant 0 : index
    %c6 = arith.constant 6 : index
    %c0_22 = arith.constant 0 : index
    %39 = vector.load %arg10[%c0_21, %c6, %c0_22] : memref<1x12x128xf32, #tpu.memory_space<vmem>>, vector<1x6x128xf32>
    %40 = vector.shape_cast %39 : vector<1x6x128xf32> to vector<6x128xf32>
    %41 = vector.shape_cast %38 : vector<6x128xf32> to vector<1x6x128xf32>
    tpu.vector_store %arg10[%c0_21, %c6, %c0_22], %41 {strides = array<i32>} : memref<1x12x128xf32, #tpu.memory_space<vmem>>, vector<1x6x128xf32>,
    return
  }
  func.func @transform_0(%arg0: i32, %arg1: memref<2xi32, #tpu.memory_space<smem>>, %arg2: memref<2xi32, #tpu.memory_space<smem>>) -> (i32, i32) {
    %c0_i32 = arith.constant 0 : i32
    %c0_i32_0 = arith.constant 0 : i32
    return %arg0, %c0_i32 : i32, i32
  }
  func.func @transform_1(%arg0: i32, %arg1: memref<2xi32, #tpu.memory_space<smem>>, %arg2: memref<2xi32, #tpu.memory_space<smem>>) -> (i32, i32) {
    %c0_i32 = arith.constant 0 : i32
    %c0_i32_0 = arith.constant 0 : i32
    return %arg0, %c0_i32 : i32, i32
  }
  func.func @transform_2(%arg0: i32, %arg1: memref<2xi32, #tpu.memory_space<smem>>, %arg2: memref<2xi32, #tpu.memory_space<smem>>) -> (i32, i32) {
    %c0_i32 = arith.constant 0 : i32
    %c0_i32_0 = arith.constant 0 : i32
    %c0_i32_1 = arith.constant 0 : i32
    return %c0_i32, %c0_i32_0 : i32, i32
  }
  func.func @transform_3(%arg0: i32, %arg1: memref<2xi32, #tpu.memory_space<smem>>, %arg2: memref<2xi32, #tpu.memory_space<smem>>) -> (i32, i32) {
    %c0_i32 = arith.constant 0 : i32
    %c0_i32_0 = arith.constant 0 : i32
    %c0_i32_1 = arith.constant 0 : i32
    return %c0_i32, %c0_i32_0 : i32, i32
  }
  func.func @transform_4(%arg0: i32, %arg1: memref<2xi32, #tpu.memory_space<smem>>, %arg2: memref<2xi32, #tpu.memory_space<smem>>) -> (i32, i32) {
    %c0_i32 = arith.constant 0 : i32
    %c0_i32_0 = arith.constant 0 : i32
    %c0_i32_1 = arith.constant 0 : i32
    return %c0_i32, %c0_i32_0 : i32, i32
  }
  func.func @transform_5(%arg0: i32, %arg1: memref<2xi32, #tpu.memory_space<smem>>, %arg2: memref<2xi32, #tpu.memory_space<smem>>) -> (i32, i32) {
    %c0_i32 = arith.constant 0 : i32
    %c0_i32_0 = arith.constant 0 : i32
    %c0_i32_1 = arith.constant 0 : i32
    return %c0_i32, %c0_i32_0 : i32, i32
  }
  func.func @transform_6(%arg0: i32, %arg1: memref<2xi32, #tpu.memory_space<smem>>, %arg2: memref<2xi32, #tpu.memory_space<smem>>) -> (i32, i32) {
    %c0_i32 = arith.constant 0 : i32
    %c0_i32_0 = arith.constant 0 : i32
    %c0_i32_1 = arith.constant 0 : i32
    return %c0_i32, %c0_i32_0 : i32, i32
  }
  func.func @transform_7(%arg0: i32, %arg1: memref<2xi32, #tpu.memory_space<smem>>, %arg2: memref<2xi32, #tpu.memory_space<smem>>) -> (i32, i32, i32) {
    %c0_i32 = arith.constant 0 : i32
    %c0_i32_0 = arith.constant 0 : i32
    %c0_i32_1 = arith.constant 0 : i32
    return %arg0, %c0_i32, %c0_i32_0 : i32, i32, i32
  }
}

</mosaic_0001>

<bundles_post_ra>
// kernel: tpu_custom_call.1
= control target key start
LH: loop header
LB: loop body
LE: loop exit
PB: predicated region body
PF: predicated region fallthrough
CT: control target
= control target key end

     0   :  { %s722_s0 = inlined_call_operand.vmem [shape: s32[2], index: 0, kind: input, shape index: {}]   ;;  %s723_s2 = inlined_call_operand.vmem [shape: bf16[32,16], index: 2, kind: input, shape index: {}]   ;;  %s724_s3 = inlined_call_operand.vmem [shape: bf16[32,16], index: 3, kind: input, shape index: {}]   ;;  %s725_s4 = inlined_call_operand.vmem [shape: bf16[16,128], index: 4, kind: input, shape index: {}]   ;;  %s726_s5 = inlined_call_operand.vmem [shape: bf16[16,128], index: 5, kind: input, shape index: {}]   ;;  %s727_s6 = inlined_call_operand.vmem [shape: f32[1,128], index: 6, kind: input, shape index: {}]   ;;  %s728_s7 = inlined_call_operand.vmem [shape: f32[1,128], index: 7, kind: input, shape index: {}]   ;;  %s729_s8 = inlined_call_operand.vmem [shape: f32[1,128], index: 8, kind: input, shape index: {}]   ;;  %s730_s9 = inlined_call_operand.vmem [shape: f32[2,12,128], index: 9, kind: output, shape index: {}]   ;;  %s731_s1 = inlined_call_operand.vmem [shape: s32[2], index: 1, kind: input, shape index: {}]  }
   0x1   :  { %s14_s11 = sshll.u32 %s722_s0, 4  ;;  %s18_s14 = sshll.u32 %s731_s1, 4  ;;  %s15_s11 = int_to_ptr.vmem [resolvable:$true] %s14_s11  ;;  %s19_s14 = int_to_ptr.vmem [resolvable:$true] %s18_s14 }
   0x2   :  { %s586_s15 = scalar_lea.vmem %s15_s11, 16  ;;  %p591_p1 = scmp.lt.s32.totalorder %s15_s11, %s15_s11 }
   0x3   :  { %p587_p0 = scmp.ne.s32.totalorder %s15_s11, %s586_s15  ;;  %p592_p2 = scmp.lt.s32.totalorder %s586_s15, %s586_s15 }
   0x5   :  { %p593_p3 = por %p592_p2, %p591_p1 }
   0x7   :  { %p594_p4 = pnand %p593_p3, %p587_p0 }
   0x9   :  { %597 = shalt.err (!%p594_p4)  }
   0xa   :  { %s620_s16 = smov [#allocation3]   ;;  %s598_s17 = scalar_lea.vmem %s19_s14, 16 }
   0xb   :  { %17 = dma.vmem_to_smem %s15_s11, 16, %s620_s16, [#allocation2] }
   0xc   :  { %p599_p5 = scmp.ne.s32.totalorder %s19_s14, %s598_s17  ;;  %p603_p6 = scmp.lt.s32.totalorder %s19_s14, %s19_s14 }
   0xd   :  { %p604_p7 = scmp.lt.s32.totalorder %s598_s17, %s598_s17 }
   0xf   :  { %p605_p8 = por %p604_p7, %p603_p6 }
  0x11   :  { %p606_p9 = pnand %p605_p8, %p599_p5 }
  0x13   :  { %609 = shalt.err (!%p606_p9)  }
  0x14   :  { %s621_s0 = smov [#allocation4]  }
  0x15   :  { %21 = dma.vmem_to_smem %s19_s14, 16, %s621_s0, [#allocation2] }
  0x16   :  { %614 = dma.done.wait [#allocation2], 32 }
  0x17   :  { %615 = vsyncadd [#allocation2], 4294967264 }
  0x18   :  { %23 = sfence }
  0x19   :  { %s680_s1 = smov 0  }
  0x1a LB: > { %s686_s18 = sadd.s32 4294967295, %s618_s1   ;;  %p536_p10 = scmp.ge.s32.totalorder %s618_s1, 1  ;;  %s618_s1 = sphi %s680_s1, %s29_s1  }
  0x1b   : > { %p261_p11 = scmp.lt.s32.totalorder %s618_s1, 3 }
  0x1d   : > { %p262_p12 = pnand %p536_p10, %p261_p11 }
  0x1e   : > { %s537_s23 = sshll.u32 (!%p262_p12), %s686_s18, 1  ;;  %p310_p13 = scmp.lt.s32.totalorder (!%p262_p12), %s686_s18, 1 }
  0x1f   : > { %265 = sbr.rel (%p262_p12) target bundleno = 241 (0xf1), region = 48  ;;  %p299_p0 = scmp.lt.s32.totalorder (!%p262_p12), %s537_s23, 3 }
  0x20   : > { %s316_s17 = sld [smem:[#allocation3 + %s686_s18]] (!%p262_p12) }
  0x21   : > { %s317_s0 = sld [smem:[#allocation4 + %s686_s18]] (!%p262_p12) }
  0x24   : > { %v582_v0 = vld [vmem:[%s725_s4] sm:$0xff]   ;;  %v622_v1 = vmov 0.0   ;;  %vm623_vm0 = vmmov 0   ;;  %s311_s24 = scalar_select %p310_p13, %s686_s18, 1  ;;  %vm342_vm1 = vcmask 130048   ;;  %v386_v6 = vlaneseq }
  0x25   : > { %558 = vmatprep.subr.bf16.mxu0 %v622_v1  ;;  %564 = vmatprep.subr.bf16.mxu1 %v622_v1  ;;  %v583_v2 = vld [vmem:[%s726_s5] sm:$0xff]   ;;  %s733_s23 = smov (!%p299_p0, %s537_s23), 3 }
  0x26   : > { %559 = vmatpush3.bf16.msra.mxu0 %v582_v0  ;;  %560 = vmatprep.mubr.msk.bf16.mxu0 %vm623_vm0, %v622_v1  ;;  %v318_v3 = vld [vmem:[%s729_s8] sm:$0x1]  ;;  %s553_s27 = sshll.u32 %s311_s24, 4  ;;  %s538_s28 = sshll.u32 %s733_s23, 2  ;;  %v387_v7 = vshrl.u32 %v386_v6, 7  ;;  %v388_v8 = vstv %s316_s17 }
  0x27   : > { %565 = vmatpush3.bf16.msra.mxu1 %v583_v2  ;;  %566 = vmatprep.mubr.msk.bf16.mxu1 %vm623_vm0, %v622_v1  ;;  %s314_s10 = scalar_lea.vmem %s730_s9, %s553_s27  ;;  %s302_s13 = scalar_lea.vmem %s723_s2, %s538_s28  ;;  %v543_v9 = vld [vmem:[%s727_s6] ss:$0 sm:$0xff]  ;;  %v459_v10 = vstv %s317_s0 }
  0x28   : > { %s308_s16 = scalar_lea.vmem %s724_s3, %s538_s28  ;;  %319 = vst [vmem:[%s314_s10] sm:$0x1] %v318_v3  ;;  %v584_v4 = vld [vmem:[%s302_s13] sm:$0xff]   ;;  %vm389_vm2 = vcmp.lt.s32.totalorder %v387_v7, %v388_v8  ;;  %vm460_vm3 = vcmp.lt.s32.totalorder %v387_v7, %v459_v10 }
  0x29   : > { %v585_v5 = vld [vmem:[%s308_s16] sm:$0xff]   ;;  %561 = vmatmul.mubr.msk.bf16.vlgmr.msra.gmra.mxu0 %vm342_vm1, %v584_v4 }
  0x2a   : > { %567 = vmatmul.mubr.msk.bf16.vlgmr.msra.gmra.mxu1 %vm342_vm1, %v585_v5  ;;  %v547_v11 = vld [vmem:[%s728_s7] ss:$0 sm:$0xff] }
  0xe9   : > { %v380_v12 = vpop.f32.mrf.mxu0 }
  0xea   : > { %v381_v13 = vadd.f32 %v543_v9, %v380_v12  ;;  %v453_v14 = vpop.f32.mrf.mxu1 }
  0xeb   : > { %v454_v15 = vadd.f32 %v547_v11, %v453_v14  ;;  %v562_v16 = vpop.f32.mrf.mxu0 }
  0xec   : > { %v392_v17 = vsel %vm389_vm2, %v381_v13, 0.0  ;;  %v568_v18 = vpop.f32.mrf.mxu1 }
  0xed   : > { %393 = vst [vmem:[%s314_s10 + $0x1] sm:$0x1f] %v392_v17  ;;  %v463_v19 = vsel %vm460_vm3, %v454_v15, 0.0  ;;  %v383_v20 = vpop.f32.mrf.mxu0 }
  0xee   : > { %464 = vst [vmem:[%s314_s10 + $0x6] sm:$0x3f] %v463_v19  ;;  %v456_v21 = vpop.f32.mrf.mxu1 }
  0xef   : > { %v563_v22 = vpop.f32.mrf.mxu0 }
  0xf0   : > { %v569_v23 = vpop.f32.mrf.mxu1 }
  0xf1 PF: > { %s29_s1 = sadd.s32 1, %s618_s1  }
  0xf2   : > { %p26_p1 = scmp.ge.s32.totalorder %s29_s1, 4  }
  0xf4   :  { %28 = sbr.rel (!%p26_p1) target bundleno = 26 (0x1a), region = 81 }

</bundles_post_ra>
